<compile_context>
chip_gen: v5e
topology: v5e:2x2
jax: 0.10.0
libtpu: 0.0.40
codegen_flags: <defaults>
</compile_context>

<pallas_src>
import functools

import jax
import jax.numpy as jnp
from jax.experimental import pallas as pl
from jax.experimental.pallas import tpu as pltpu


IN_DIM = 28 * 28
HIDDEN_DIM = 32
OUT_DIM = 10
H_PAD = 128          # lane-dense hidden width (zero-padded from 32)


def _round_up(n, m):
    return ((n + m - 1) // m) * m


# ---------------------------------------------------------------------------
# Pallas kernel: fused 3-layer MLP + log-softmax (one batch tile per step)
# ---------------------------------------------------------------------------
def _classifier_bbb_kernel(x_ref, w1_ref, b1_ref, w2_ref, b2_ref,
                           w3_ref, b3_ref, o_ref):
    # x streamed from HBM once as f32; cast to bf16 in-kernel for the MXU.
    x = x_ref[...].astype(jnp.bfloat16)

    # layer 1: (TB, 784)bf16 @ (784, 128)bf16 -> f32, + bias, ReLU
    h = jnp.dot(x, w1_ref[...], preferred_element_type=jnp.float32)
    h = jnp.maximum(h + b1_ref[...], 0.0)

    # layer 2: (TB, 128) @ (128, 128) -> f32, + bias, ReLU
    h = jnp.dot(h.astype(w2_ref.dtype), w2_ref[...],
                preferred_element_type=jnp.float32)
    h = jnp.maximum(h + b2_ref[...], 0.0)

    # output layer: (TB, 128) @ (128, 10) -> f32, + bias
    logits = jnp.dot(h.astype(w3_ref.dtype), w3_ref[...],
                     preferred_element_type=jnp.float32)
    logits = logits + b3_ref[...]

    # numerically stable log_softmax along dim=1 (only the 10 real classes)
    m = jnp.max(logits, axis=-1, keepdims=True)
    shifted = logits - m
    lse = jnp.log(jnp.sum(jnp.exp(shifted), axis=-1, keepdims=True))
    o_ref[...] = (shifted - lse).astype(o_ref.dtype)


def classifier_bbb_forward(x_flat, w1, b1, w2, b2, w3, b3, *, block_b=2048):
    """x_flat: (B, 784) f32.  w*: (in, out) bf16 (hidden padded to 128).
    b*: (1, out) f32.  Returns (B, OUT_DIM) f32 log-probabilities."""
    B, in_dim = x_flat.shape
    h_pad = w1.shape[1]
    out_dim = w3.shape[1]

    # Row tile:
    #  * tiny batches: single full-extent block (no (8,) divisibility needed).
    #  * big batches: large tile (amortizes ~0.35 us/step overhead) but capped
    #    at ceil(B/2) rounded to 8 so the grid keeps >= 2 steps and the
    #    "parallel" axis can split across v7x's two TensorCores.
    if B <= 256:
        tb = B
    else:
        tb = min(block_b, _round_up(pl.cdiv(B, 2), 8))
    grid = (pl.cdiv(B, tb),)   # partial last block handled by Pallas

    resident = lambda i: (0, 0)   # weights/biases: same block every step

    flops = 2 * B * (in_dim * h_pad + h_pad * h_pad + h_pad * out_dim)
    bytes_accessed = int(
        x_flat.size * x_flat.dtype.itemsize
        + sum(a.size * a.dtype.itemsize for a in (w1, b1, w2, b2, w3, b3))
        + B * out_dim * 4)
    cost = pl.CostEstimate(flops=flops,
                           transcendentals=B * out_dim,
                           bytes_accessed=bytes_accessed)

    return pl.pallas_call(
        _classifier_bbb_kernel,
        out_shape=jax.ShapeDtypeStruct((B, out_dim), jnp.float32),
        grid=grid,
        in_specs=[
            pl.BlockSpec((tb, in_dim), lambda i: (i, 0)),      # x: row-tiled f32
            pl.BlockSpec((in_dim, h_pad), resident),           # w1
            pl.BlockSpec((1, h_pad), resident),                # b1
            pl.BlockSpec((h_pad, h_pad), resident),            # w2
            pl.BlockSpec((1, h_pad), resident),                # b2
            pl.BlockSpec((h_pad, out_dim), resident),          # w3
            pl.BlockSpec((1, out_dim), resident),              # b3
        ],
        out_specs=pl.BlockSpec((tb, out_dim), lambda i: (i, 0)),
        compiler_params=pltpu.CompilerParams(
            dimension_semantics=("parallel",),      # megacore split on v7x
            vmem_limit_bytes=32 * 1024 * 1024),     # headroom on v7x's 64 MiB
        cost_estimate=cost,
    )(x_flat, w1, b1, w2, b2, w3, b3)


# ---------------------------------------------------------------------------
# Parameter setup / Bayesian weight sampling (plain-JAX glue, fused by XLA
# inside the same jit as the Pallas call)
# ---------------------------------------------------------------------------
def init_linear_bbb_params(key, in_dim, out_dim):
    """Deterministic init of mu / rho, PyTorch (out_dim, in_dim) convention."""
    k_wmu, k_wrho, k_bmu, k_brho = jax.random.split(key, 4)
    return dict(
        w_mu=jax.random.uniform(k_wmu, (out_dim, in_dim), jnp.float32, -0.2, 0.2),
        w_rho=jax.random.uniform(k_wrho, (out_dim, in_dim), jnp.float32, -5.0, -4.0),
        b_mu=jax.random.uniform(k_bmu, (out_dim,), jnp.float32, -0.2, 0.2),
        b_rho=jax.random.uniform(k_brho, (out_dim,), jnp.float32, -5.0, -4.0),
    )


def sample_linear_bbb(key, params):
    """Reparameterization sample: w = mu + softplus(rho) * eps."""
    k_w, k_b = jax.random.split(key)
    eps_w = jax.random.normal(k_w, params["w_mu"].shape, jnp.float32)
    eps_b = jax.random.normal(k_b, params["b_mu"].shape, jnp.float32)
    w = params["w_mu"] + jax.nn.softplus(params["w_rho"]) * eps_w   # (out, in)
    b = params["b_mu"] + jax.nn.softplus(params["b_rho"]) * eps_b   # (out,)
    # kernel wants (in, out) weights and (1, out) bias
    return w.T, b.reshape(1, -1)


def _pad_hidden(w1, b1, w2, b2, w3, b3, h_pad):
    """Zero-pad the hidden dim to h_pad; math is unchanged (ReLU(0)=0)."""
    ph = h_pad - w1.shape[1]
    w1 = jnp.pad(w1, ((0, 0), (0, ph)))
    b1 = jnp.pad(b1, ((0, 0), (0, ph)))
    w2 = jnp.pad(w2, ((0, ph), (0, ph)))
    b2 = jnp.pad(b2, ((0, 0), (0, ph)))
    w3 = jnp.pad(w3, ((0, ph), (0, 0)))
    return w1, b1, w2, b2, w3, b3


@functools.partial(jax.jit, static_argnames=("block_b",))
def run_model(x_nchw, params, sample_key, block_b=2048):
    B = x_nchw.shape[0]
    x_flat = x_nchw.reshape(B, -1)                  # == torch .view(-1, 28*28)

    k1, k2, k3 = jax.random.split(sample_key, 3)
    w1, b1 = sample_linear_bbb(k1, params["h1"])
    w2, b2 = sample_linear_bbb(k2, params["h2"])
    w3, b3 = sample_linear_bbb(k3, params["out"])
    w1, b1, w2, b2, w3, b3 = _pad_hidden(w1, b1, w2, b2, w3, b3, H_PAD)

    # Weights go to bf16 for the MXU; x stays f32 (cast in-kernel to avoid an
    # extra HBM pass); biases / accumulation / softmax stay f32.
    w1 = w1.astype(jnp.bfloat16)
    w2 = w2.astype(jnp.bfloat16)
    w3 = w3.astype(jnp.bfloat16)

    # TODO(synk): fusing the PRNG-based weight sampling into the kernel
    # (pltpu.prng_seed / stateful_normal into VMEM scratch) conflicts with the
    # per-core scratch of the "parallel" batch axis; kept as fused XLA glue.
    return classifier_bbb_forward(x_flat, w1, b1, w2, b2, w3, b3,
                                  block_b=block_b)


# ---------------------------------------------------------------------------
# main
# ---------------------------------------------------------------------------
if __name__ == "__main__":
    BATCH = 2

    key = jax.random.PRNGKey(0)
    k_x, k_p1, k_p2, k_p3, k_sample = jax.random.split(key, 5)

    # deterministic example input, NCHW (B, 1, 28, 28)
    x = jax.random.normal(k_x, (BATCH, 1, 28, 28), jnp.float32)

    # deterministic variational parameters for the three Linear_BBB layers
    params = dict(
        h1=init_linear_bbb_params(k_p1, IN_DIM, HIDDEN_DIM),
        h2=init_linear_bbb_params(k_p2, HIDDEN_DIM, HIDDEN_DIM),
        out=init_linear_bbb_params(k_p3, HIDDEN_DIM, OUT_DIM),
    )

    log_probs = run_model(x, params, k_sample)
    jax.block_until_ready(log_probs)

    # sanity: log_softmax rows must exponentiate-and-sum to ~1
    assert log_probs.shape == (BATCH, OUT_DIM)
    row_sums = jnp.exp(log_probs).sum(axis=1)
    assert bool(jnp.all(jnp.abs(row_sums - 1.0) < 1e-4))
    assert bool(jnp.all(jnp.isfinite(log_probs)))

    # TODO(synk): log_prior / log_post / sample_elbo (Gaussian log-density
    # bookkeeping for the ELBO) are training-time scalars, not part of the
    # forward hot path; left to host-side JAX if ever needed.

    print("KERNEL_OK")
</pallas_src>

<mosaic_0001>
module attributes {stable_mosaic.version = 11 : i64} {
  func.func @_classifier_bbb_kernel(%arg0: i32, %arg1: memref<2x784xf32, #tpu.memory_space<vmem>>, %arg2: memref<784x128xbf16, #tpu.memory_space<vmem>>, %arg3: memref<1x128xf32, #tpu.memory_space<vmem>>, %arg4: memref<128x128xbf16, #tpu.memory_space<vmem>>, %arg5: memref<1x128xf32, #tpu.memory_space<vmem>>, %arg6: memref<128x10xbf16, #tpu.memory_space<vmem>>, %arg7: memref<1x10xf32, #tpu.memory_space<vmem>>, %arg8: memref<2x10xf32, #tpu.memory_space<vmem>>) attributes {dimension_semantics = [#tpu.dimension_semantics<parallel>], iteration_bounds = array<i64: 1>, scalar_prefetch = 0 : i64, scratch_operands = 0 : i64, tpu.core_type = #tpu.core_type<tc>, window_params = [{transform_indices = @transform_0, window_bounds = array<i64: 2, 784>}, {pipeline_mode = #tpu.pipeline_mode<synchronous>, transform_indices = @transform_1, window_bounds = array<i64: 784, 128>}, {pipeline_mode = #tpu.pipeline_mode<synchronous>, transform_indices = @transform_2, window_bounds = array<i64: 1, 128>}, {pipeline_mode = #tpu.pipeline_mode<synchronous>, transform_indices = @transform_3, window_bounds = array<i64: 128, 128>}, {pipeline_mode = #tpu.pipeline_mode<synchronous>, transform_indices = @transform_4, window_bounds = array<i64: 1, 128>}, {pipeline_mode = #tpu.pipeline_mode<synchronous>, transform_indices = @transform_5, window_bounds = array<i64: 128, 10>}, {pipeline_mode = #tpu.pipeline_mode<synchronous>, transform_indices = @transform_6, window_bounds = array<i64: 1, 10>}, {transform_indices = @transform_7, window_bounds = array<i64: 2, 10>}]} {
    %c0 = arith.constant 0 : index
    %c0_0 = arith.constant 0 : index
    %0 = vector.load %arg1[%c0, %c0_0] : memref<2x784xf32, #tpu.memory_space<vmem>>, vector<2x784xf32>
    %1 = arith.truncf %0 : vector<2x784xf32> to vector<2x784xbf16>
    %c0_1 = arith.constant 0 : index
    %c0_2 = arith.constant 0 : index
    %2 = vector.load %arg2[%c0_1, %c0_2] : memref<784x128xbf16, #tpu.memory_space<vmem>>, vector<784x128xbf16>
    %cst = arith.constant dense<0.000000e+00> : vector<2x128xf32>
    %3 = tpu.matmul %1, %2, %cst {dimension_numbers = #tpu.dot_dimension_numbers<[1], [0], [0], [1], [0, 0, 1, 1], [], []>} : vector<2x784xbf16>, vector<784x128xbf16>, vector<2x128xf32> -> vector<2x128xf32>
    %c0_3 = arith.constant 0 : index
    %c0_4 = arith.constant 0 : index
    %4 = vector.load %arg3[%c0_3, %c0_4] : memref<1x128xf32, #tpu.memory_space<vmem>>, vector<1x128xf32>
    %5 = vector.broadcast %4 : vector<1x128xf32> to vector<2x128xf32>
    %6 = arith.addf %3, %5 : vector<2x128xf32>
    %cst_5 = arith.constant 0.000000e+00 : f32
    %7 = vector.broadcast %cst_5 : f32 to vector<2x128xf32>
    %8 = arith.maximumf %6, %7 : vector<2x128xf32>
    %9 = arith.truncf %8 : vector<2x128xf32> to vector<2x128xbf16>
    %c0_6 = arith.constant 0 : index
    %c0_7 = arith.constant 0 : index
    %10 = vector.load %arg4[%c0_6, %c0_7] : memref<128x128xbf16, #tpu.memory_space<vmem>>, vector<128x128xbf16>
    %cst_8 = arith.constant dense<0.000000e+00> : vector<2x128xf32>
    %11 = tpu.matmul %9, %10, %cst_8 {dimension_numbers = #tpu.dot_dimension_numbers<[1], [0], [0], [1], [0, 0, 1, 1], [], []>} : vector<2x128xbf16>, vector<128x128xbf16>, vector<2x128xf32> -> vector<2x128xf32>
    %c0_9 = arith.constant 0 : index
    %c0_10 = arith.constant 0 : index
    %12 = vector.load %arg5[%c0_9, %c0_10] : memref<1x128xf32, #tpu.memory_space<vmem>>, vector<1x128xf32>
    %13 = vector.broadcast %12 : vector<1x128xf32> to vector<2x128xf32>
    %14 = arith.addf %11, %13 : vector<2x128xf32>
    %cst_11 = arith.constant 0.000000e+00 : f32
    %15 = vector.broadcast %cst_11 : f32 to vector<2x128xf32>
    %16 = arith.maximumf %14, %15 : vector<2x128xf32>
    %17 = arith.truncf %16 : vector<2x128xf32> to vector<2x128xbf16>
    %c0_12 = arith.constant 0 : index
    %c0_13 = arith.constant 0 : index
    %18 = vector.load %arg6[%c0_12, %c0_13] : memref<128x10xbf16, #tpu.memory_space<vmem>>, vector<128x10xbf16>
    %cst_14 = arith.constant dense<0.000000e+00> : vector<2x10xf32>
    %19 = tpu.matmul %17, %18, %cst_14 {dimension_numbers = #tpu.dot_dimension_numbers<[1], [0], [0], [1], [0, 0, 1, 1], [], []>} : vector<2x128xbf16>, vector<128x10xbf16>, vector<2x10xf32> -> vector<2x10xf32>
    %c0_15 = arith.constant 0 : index
    %c0_16 = arith.constant 0 : index
    %20 = vector.load %arg7[%c0_15, %c0_16] : memref<1x10xf32, #tpu.memory_space<vmem>>, vector<1x10xf32>
    %21 = vector.broadcast %20 : vector<1x10xf32> to vector<2x10xf32>
    %22 = arith.addf %19, %21 : vector<2x10xf32>
    %cst_17 = arith.constant dense<0xFF800000> : vector<2xf32>
    %23 = vector.multi_reduction <maximumf>, %22, %cst_17 [1] : vector<2x10xf32> to vector<2xf32>
    %24 = vector.shape_cast %23 : vector<2xf32> to vector<2x1xf32>
    %25 = vector.broadcast %24 : vector<2x1xf32> to vector<2x10xf32>
    %26 = arith.subf %22, %25 : vector<2x10xf32>
    %27 = math.exp %26 : vector<2x10xf32>
    %cst_18 = arith.constant dense<0.000000e+00> : vector<2xf32>
    %28 = vector.multi_reduction <add>, %27, %cst_18 [1] : vector<2x10xf32> to vector<2xf32>
    %29 = vector.shape_cast %28 : vector<2xf32> to vector<2x1xf32>
    %30 = math.log %29 : vector<2x1xf32>
    %31 = vector.broadcast %30 : vector<2x1xf32> to vector<2x10xf32>
    %32 = arith.subf %26, %31 : vector<2x10xf32>
    %c0_19 = arith.constant 0 : index
    %c0_20 = arith.constant 0 : index
    %33 = vector.load %arg8[%c0_19, %c0_20] : memref<2x10xf32, #tpu.memory_space<vmem>>, vector<2x10xf32>
    tpu.vector_store %arg8[%c0_19, %c0_20], %32 {strides = array<i32>} : memref<2x10xf32, #tpu.memory_space<vmem>>, vector<2x10xf32>,
    return
  }
  func.func @transform_0(%arg0: i32) -> (i32, i32) {
    %c0_i32 = arith.constant 0 : i32
    %c0_i32_0 = arith.constant 0 : i32
    return %arg0, %c0_i32 : i32, i32
  }
  func.func @transform_1(%arg0: i32) -> (i32, i32) {
    %c0_i32 = arith.constant 0 : i32
    %c0_i32_0 = arith.constant 0 : i32
    %c0_i32_1 = arith.constant 0 : i32
    return %c0_i32, %c0_i32_0 : i32, i32
  }
  func.func @transform_2(%arg0: i32) -> (i32, i32) {
    %c0_i32 = arith.constant 0 : i32
    %c0_i32_0 = arith.constant 0 : i32
    %c0_i32_1 = arith.constant 0 : i32
    return %c0_i32, %c0_i32_0 : i32, i32
  }
  func.func @transform_3(%arg0: i32) -> (i32, i32) {
    %c0_i32 = arith.constant 0 : i32
    %c0_i32_0 = arith.constant 0 : i32
    %c0_i32_1 = arith.constant 0 : i32
    return %c0_i32, %c0_i32_0 : i32, i32
  }
  func.func @transform_4(%arg0: i32) -> (i32, i32) {
    %c0_i32 = arith.constant 0 : i32
    %c0_i32_0 = arith.constant 0 : i32
    %c0_i32_1 = arith.constant 0 : i32
    return %c0_i32, %c0_i32_0 : i32, i32
  }
  func.func @transform_5(%arg0: i32) -> (i32, i32) {
    %c0_i32 = arith.constant 0 : i32
    %c0_i32_0 = arith.constant 0 : i32
    %c0_i32_1 = arith.constant 0 : i32
    return %c0_i32, %c0_i32_0 : i32, i32
  }
  func.func @transform_6(%arg0: i32) -> (i32, i32) {
    %c0_i32 = arith.constant 0 : i32
    %c0_i32_0 = arith.constant 0 : i32
    %c0_i32_1 = arith.constant 0 : i32
    return %c0_i32, %c0_i32_0 : i32, i32
  }
  func.func @transform_7(%arg0: i32) -> (i32, i32) {
    %c0_i32 = arith.constant 0 : i32
    %c0_i32_0 = arith.constant 0 : i32
    return %arg0, %c0_i32 : i32, i32
  }
}

</mosaic_0001>

<bundles_post_ra>
// kernel: run_model.3
= control target key start
LH: loop header
LB: loop body
LE: loop exit
PB: predicated region body
PF: predicated region fallthrough
CT: control target
= control target key end

     0   :  { %s1360_s0 = inlined_call_operand.vmem [shape: f32[2,784], index: 0, kind: input, shape index: {}]   ;;  %s1361_s1 = inlined_call_operand.vmem [shape: bf16[784,128], index: 1, kind: input, shape index: {}]   ;;  %s1362_s2 = inlined_call_operand.vmem [shape: f32[1,128], index: 2, kind: input, shape index: {}]   ;;  %s1363_s3 = inlined_call_operand.vmem [shape: bf16[128,128], index: 3, kind: input, shape index: {}]   ;;  %s1364_s4 = inlined_call_operand.vmem [shape: f32[1,128], index: 4, kind: input, shape index: {}]   ;;  %s1365_s5 = inlined_call_operand.vmem [shape: bf16[128,10], index: 5, kind: input, shape index: {}]   ;;  %s1366_s6 = inlined_call_operand.vmem [shape: f32[1,10], index: 6, kind: input, shape index: {}]   ;;  %s1367_s7 = inlined_call_operand.hbm [shape: f32[2,10], index: 7, kind: output, shape index: {}]  }
   0x1   :  { %v1011_v0 = vld [vmem:[%s1361_s1 + $0x38] sm:$0xff]  ;;  %v1010_v3 = vld [vmem:[%s1361_s1 + $0x30] sm:$0xff]  ;;  %v1009_v8 = vld [vmem:[%s1361_s1 + $0x28] sm:$0xff] }
   0x2   :  { %v1019_v1 = vld [vmem:[%s1361_s1 + $0x78] sm:$0xff]  ;;  %456 = vmatpush.bf16.msra.mxu0 %v1011_v0  ;;  %v1018_v4 = vld [vmem:[%s1361_s1 + $0x70] sm:$0xff]  ;;  %v1017_v9 = vld [vmem:[%s1361_s1 + $0x68] sm:$0xff] }
   0x3   :  { %v1027_v2 = vld [vmem:[%s1361_s1 + $0xb8] sm:$0xff]  ;;  %469 = vmatpush.bf16.msra.mxu1 %v1019_v1  ;;  %v1026_v5 = vld [vmem:[%s1361_s1 + $0xb0] sm:$0xff]  ;;  %v1025_v10 = vld [vmem:[%s1361_s1 + $0xa8] sm:$0xff] }
   0x4   :  { %482 = vmatpush.bf16.msra.mxu2 %v1027_v2  ;;  %v1035_v6 = vld [vmem:[%s1361_s1 + $0xf8] sm:$0xff]  ;;  %v1034_v7 = vld [vmem:[%s1361_s1 + $0xf0] sm:$0xff]  ;;  %v1033_v11 = vld [vmem:[%s1361_s1 + $0xe8] sm:$0xff] }
   0x5   :  { %495 = vmatpush.bf16.msra.mxu3 %v1035_v6  ;;  %v1008_v12 = vld [vmem:[%s1361_s1 + $0x20] sm:$0xff]  ;;  %v1007_v17 = vld [vmem:[%s1361_s1 + $0x18] sm:$0xff]  ;;  %v29_v19 = vld [vmem:[%s1360_s0 + $0x8] sm:$0x3f] }
   0x6   :  { %457 = vmatpush.bf16.msra.mxu0 %v1010_v3  ;;  %v1016_v13 = vld [vmem:[%s1361_s1 + $0x60] sm:$0xff]  ;;  %v1015_v18 = vld [vmem:[%s1361_s1 + $0x58] sm:$0xff]  ;;  %34 = vst [vmem:[#allocation1 + $0x20] ss:$4 sm:$0xff] %v29_v19 }
   0x7   :  { %470 = vmatpush.bf16.msra.mxu1 %v1018_v4  ;;  %v1024_v14 = vld [vmem:[%s1361_s1 + $0xa0] sm:$0xff]  ;;  %v1023_v20 = vld [vmem:[%s1361_s1 + $0x98] sm:$0xff] }
   0x8   :  { %483 = vmatpush.bf16.msra.mxu2 %v1026_v5  ;;  %v28_v15 = vld [vmem:[%s1360_s0] sm:$0xff] }
   0x9   :  { %496 = vmatpush.bf16.msra.mxu3 %v1034_v7  ;;  %32 = vst [vmem:[#allocation1] ss:$4 sm:$0xff] %v28_v15  ;;  %v1032_v16 = vld [vmem:[%s1361_s1 + $0xe0] sm:$0xff] }
   0xa   :  { %458 = vmatpush.bf16.msra.mxu0 %v1009_v8 }
   0xb   :  { %471 = vmatpush.bf16.msra.mxu1 %v1017_v9 }
   0xc   :  { %484 = vmatpush.bf16.msra.mxu2 %v1025_v10 }
   0xd   :  { %497 = vmatpush.bf16.msra.mxu3 %v1033_v11 }
   0xe   :  { %459 = vmatpush.bf16.msra.mxu0 %v1008_v12 }
   0xf   :  { %472 = vmatpush.bf16.msra.mxu1 %v1016_v13 }
  0x10   :  { %485 = vmatpush.bf16.msra.mxu2 %v1024_v14 }
  0x11   :  { %12 = vsyncpa [#allocation3], 0  ;;  %498 = vmatpush.bf16.msra.mxu3 %v1032_v16  ;;  %v1031_v21 = vld [vmem:[%s1361_s1 + $0xd8] sm:$0xff]  ;;  %v1006_v22 = vld [vmem:[%s1361_s1 + $0x10] sm:$0xff]  ;;  %vm452_vm0 = vcmask 130048   ;;  %vm713_vm1 = vcmask 74752  }
  0x12   :  { %460 = vmatpush.bf16.msra.mxu0 %v1007_v17  ;;  %v1014_v23 = vld [vmem:[%s1361_s1 + $0x50] sm:$0xff]  ;;  %v1005_v26 = vld [vmem:[%s1361_s1 + $0x8] sm:$0xff]  ;;  %v1004_v29 = vld [vmem:[%s1361_s1] sm:$0xff]  ;;  %s734_s19 = sshll.u32 %s1367_s7, 4  ;;  %s735_s19 = int_to_ptr.hbm [resolvable:$true] %s734_s19 }
  0x13   :  { %473 = vmatpush.bf16.msra.mxu1 %v1015_v18  ;;  %v1022_v24 = vld [vmem:[%s1361_s1 + $0x90] sm:$0xff]  ;;  %v1013_v27 = vld [vmem:[%s1361_s1 + $0x48] sm:$0xff]  ;;  %v1012_v30 = vld [vmem:[%s1361_s1 + $0x40] sm:$0xff] }
  0x14   :  { %486 = vmatpush.bf16.msra.mxu2 %v1023_v20  ;;  %v1030_v25 = vld [vmem:[%s1361_s1 + $0xd0] sm:$0xff]  ;;  %v1021_v28 = vld [vmem:[%s1361_s1 + $0x88] sm:$0xff]  ;;  %v35_v32 = vld.sshfl [vmem:[#allocation1] sm:$0xff pattern:$0x73625140] }
  0x15   :  { %499 = vmatpush.bf16.msra.mxu3 %v1031_v21  ;;  %v1029_v31 = vld [vmem:[%s1361_s1 + $0xc8] sm:$0xff]  ;;  %v1043_v34 = vld [vmem:[%s1361_s1 + $0x138] sm:$0xff]  ;;  %v1020_v36 = vld [vmem:[%s1361_s1 + $0x80] sm:$0xff]  ;;  %v49_v38 = vpack.c.bf16 %v35_v32, %v35_v32 }
  0x16   :  { %461 = vmatpush.bf16.msra.mxu0 %v1006_v22  ;;  %v36_v33 = vld.sshfl [vmem:[#allocation1 + $0x8] sm:$0xff pattern:$0x73625140]  ;;  %v1051_v35 = vld [vmem:[%s1361_s1 + $0x178] sm:$0xff]  ;;  %v1028_v40 = vld [vmem:[%s1361_s1 + $0xc0] sm:$0xff] }
  0x17   :  { %474 = vmatpush.bf16.msra.mxu1 %v1014_v23  ;;  %v37_v37 = vld.sshfl [vmem:[#allocation1 + $0x10] sm:$0xff pattern:$0x73625140]  ;;  %v50_v39 = vpack.c.bf16 %v36_v33, %v36_v33  ;;  %v1052_v41 = vld [vmem:[%s1361_s1 + $0x180] sm:$0xff]  ;;  %v1041_v47 = vld [vmem:[%s1361_s1 + $0x128] sm:$0xff] }
  0x18   :  { %487 = vmatpush.bf16.msra.mxu2 %v1022_v24  ;;  %v38_v42 = vld.sshfl [vmem:[#allocation1 + $0x18] sm:$0xff pattern:$0x73625140]  ;;  %v1042_v43 = vld [vmem:[%s1361_s1 + $0x130] sm:$0xff]  ;;  %v51_v45 = vpack.c.bf16 %v37_v37, %v37_v37  ;;  %v1049_v48 = vld [vmem:[%s1361_s1 + $0x168] sm:$0xff] }
  0x19   :  { %500 = vmatpush.bf16.msra.mxu3 %v1030_v25  ;;  %v1050_v44 = vld [vmem:[%s1361_s1 + $0x170] sm:$0xff]  ;;  %v52_v46 = vpack.c.bf16 %v38_v42, %v38_v42  ;;  %v1040_v49 = vld [vmem:[%s1361_s1 + $0x120] sm:$0xff]  ;;  %v1039_v51 = vld [vmem:[%s1361_s1 + $0x118] sm:$0xff] }
  0x1a   :  { %462 = vmatpush.bf16.msra.mxu0 %v1005_v26  ;;  %v1048_v50 = vld [vmem:[%s1361_s1 + $0x160] sm:$0xff]  ;;  %v1047_v52 = vld [vmem:[%s1361_s1 + $0x158] sm:$0xff]  ;;  %v41_v53 = vld.sshfl [vmem:[#allocation1 + $0x30] sm:$0xff pattern:$0x73625140] }
  0x1b   :  { %475 = vmatpush.bf16.msra.mxu1 %v1013_v27  ;;  %v1038_v54 = vld [vmem:[%s1361_s1 + $0x110] sm:$0xff]  ;;  %v55_v56 = vpack.c.bf16 %v41_v53, %v41_v53  ;;  %v1037_v57 = vld [vmem:[%s1361_s1 + $0x108] sm:$0xff]  ;;  %v1036_v59 = vld [vmem:[%s1361_s1 + $0x100] sm:$0xff] }
  0x1c   :  { %488 = vmatpush.bf16.msra.mxu2 %v1021_v28  ;;  %v1046_v55 = vld [vmem:[%s1361_s1 + $0x150] sm:$0xff]  ;;  %v1045_v58 = vld [vmem:[%s1361_s1 + $0x148] sm:$0xff]  ;;  %v1044_v60 = vld [vmem:[%s1361_s1 + $0x140] sm:$0xff] }
  0x1d   :  { %501 = vmatpush.bf16.msra.mxu3 %v1029_v31  ;;  %v39_v61 = vld.sshfl [vmem:[#allocation1 + $0x20] sm:$0xff pattern:$0x73625140]  ;;  %v40_v62 = vld.sshfl [vmem:[#allocation1 + $0x28] sm:$0xff pattern:$0x73625140] }
  0x1e   :  { %463 = vmatpush.bf16.msra.mxu0 %v1004_v29  ;;  %v53_v63 = vpack.c.bf16 %v39_v61, %v39_v61  ;;  %v54_v0 = vpack.c.bf16 %v40_v62, %v40_v62  ;;  %v1060_v1 = vld [vmem:[%s1363_s3 + $0x38] sm:$0xff]  ;;  %v1059_v2 = vld [vmem:[%s1363_s3 + $0x30] sm:$0xff]  ;;  %v1058_v3 = vld [vmem:[%s1363_s3 + $0x28] sm:$0xff] }
  0x1f   :  { %476 = vmatpush.bf16.msra.mxu1 %v1012_v30  ;;  %v1057_v4 = vld [vmem:[%s1363_s3 + $0x20] sm:$0xff]  ;;  %v1056_v5 = vld [vmem:[%s1363_s3 + $0x18] sm:$0xff]  ;;  %v1055_v6 = vld [vmem:[%s1363_s3 + $0x10] sm:$0xff] }
  0x20   :  { %489 = vmatpush.bf16.msra.mxu2 %v1020_v36  ;;  %v1054_v7 = vld [vmem:[%s1363_s3 + $0x8] sm:$0xff]  ;;  %v1053_v10 = vld [vmem:[%s1363_s3] sm:$0xff]  ;;  %v1068_v13 = vld [vmem:[%s1365_s5 + $0x38] sm:$0xff] }
  0x21   :  { %464 = vmatmul.bf16.vlgmr.msra.gmra.mxu0 %v49_v38  ;;  %502 = vmatpush.bf16.msra.mxu3 %v1028_v40  ;;  %v1067_v16 = vld [vmem:[%s1365_s5 + $0x30] sm:$0xff]  ;;  %v1070_v17 = vld [vmem:[%s1362_s2] ss:$0 sm:$0xff]  ;;  %v1066_v18 = vld [vmem:[%s1365_s5 + $0x28] sm:$0xff] }
  0x22   :  { %508 = vmatpush.bf16.msrb.mxu0 %v1043_v34  ;;  %477 = vmatmul.bf16.vlgmr.msra.gmra.mxu1 %v50_v39  ;;  %v1065_v22 = vld [vmem:[%s1365_s5 + $0x20] sm:$0xff]  ;;  %v1064_v24 = vld [vmem:[%s1365_s5 + $0x18] sm:$0xff]  ;;  %v1063_v27 = vld [vmem:[%s1365_s5 + $0x10] sm:$0xff] }
  0x23   :  { %521 = vmatpush.bf16.msrb.mxu1 %v1051_v35  ;;  %490 = vmatmul.bf16.vlgmr.msra.gmra.mxu2 %v51_v45  ;;  %v1062_v39 = vld [vmem:[%s1365_s5 + $0x8] sm:$0xff]  ;;  %v1061_v40 = vld [vmem:[%s1365_s5] sm:$0xff] }
  0x24   :  { %541 = vmatpush.bf16.msrb.mxu2 %v1052_v41  ;;  %503 = vmatmul.bf16.vlgmr.msra.gmra.mxu3 %v52_v46  ;;  %v1071_v41 = vld [vmem:[%s1364_s4] ss:$0 sm:$0xff]  ;;  %s1103_s4 = smov [#allocation2]  }
  0x25   :  { %617 = vmatpush.bf16.msrb.mxu3 %v1060_v1  ;;  %s732_s5 = sshll.u32 %s1103_s4, 4  ;;  %s733_s5 = int_to_ptr.vmem [resolvable:$true] %s732_s5 }
  0x26   :  { %509 = vmatpush.bf16.msrb.mxu0 %v1042_v43 }
  0x27   :  { %522 = vmatpush.bf16.msrb.mxu1 %v1050_v44 }
  0x28   :  { %700 = vmatpush.bf16.msra.mxu2 %v1068_v13 }
  0x29   :  { %618 = vmatpush.bf16.msrb.mxu3 %v1059_v2 }
  0x2a   :  { %510 = vmatpush.bf16.msrb.mxu0 %v1041_v47  ;;  %v1072_v47 = vld [vmem:[%s1366_s6] ss:$0 sm:$0xff] }
  0x2b   :  { %523 = vmatpush.bf16.msrb.mxu1 %v1049_v48 }
  0x2c   :  { %701 = vmatpush.bf16.msra.mxu2 %v1067_v16 }
  0x2d   :  { %619 = vmatpush.bf16.msrb.mxu3 %v1058_v3 }
  0x2e   :  { %511 = vmatpush.bf16.msrb.mxu0 %v1040_v49 }
  0x2f   :  { %524 = vmatpush.bf16.msrb.mxu1 %v1048_v50 }
  0x30   :  { %702 = vmatpush.bf16.msra.mxu2 %v1066_v18 }
  0x31   :  { %620 = vmatpush.bf16.msrb.mxu3 %v1057_v4 }
  0x32   :  { %512 = vmatpush.bf16.msrb.mxu0 %v1039_v51 }
  0x33   :  { %525 = vmatpush.bf16.msrb.mxu1 %v1047_v52  ;;  %939 = vmatmul.msk.bf16.vlgmr.msrb.gmra.mxu2 %vm452_vm0, %v55_v56 }
  0x34   :  { %703 = vmatpush.bf16.msra.mxu2 %v1065_v22 }
  0x35   :  { %621 = vmatpush.bf16.msrb.mxu3 %v1056_v5 }
  0x36   :  { %513 = vmatpush.bf16.msrb.mxu0 %v1038_v54 }
  0x37   :  { %526 = vmatpush.bf16.msrb.mxu1 %v1046_v55 }
  0x38   :  { %704 = vmatpush.bf16.msra.mxu2 %v1064_v24 }
  0x39   :  { %622 = vmatpush.bf16.msrb.mxu3 %v1055_v6 }
  0x3a   :  { %514 = vmatpush.bf16.msrb.mxu0 %v1037_v57 }
  0x3b   :  { %527 = vmatpush.bf16.msrb.mxu1 %v1045_v58 }
  0x3c   :  { %705 = vmatpush.bf16.msra.mxu2 %v1063_v27 }
  0x3d   :  { %623 = vmatpush.bf16.msrb.mxu3 %v1054_v7 }
  0x3e   :  { %515 = vmatpush.bf16.msrb.mxu0 %v1036_v59 }
  0x3f   :  { %528 = vmatpush.bf16.msrb.mxu1 %v1044_v60 }
  0x40   :  { %706 = vmatpush.bf16.msra.mxu2 %v1062_v39 }
  0x41   :  { %516 = vmatmul.bf16.vlgmr.msrb.gmra.mxu0 %v53_v63  ;;  %624 = vmatpush.bf16.msrb.mxu3 %v1053_v10 }
  0x42   :  { %529 = vmatmul.bf16.vlgmr.msrb.gmra.mxu1 %v54_v0 }
  0x44   :  { %707 = vmatpush.bf16.msra.mxu2 %v1061_v40 }
  0x9e   :  { %v465_v8 = vpop.f32.mrf.mxu0 }
  0x9f   :  { %v478_v9 = vpop.f32.mrf.mxu1  ;;  %v466_v19 = vadd.f32 %v1070_v17, %v465_v8 }
  0xa1   :  { %v479_v23 = vadd.f32 %v478_v9, %v466_v19 }
  0xa6   :  { %v467_v11 = vpop.f32.mrf.mxu0  ;;  %v491_v14 = vpop.f32.mrf.mxu2 }
  0xa7   :  { %v480_v12 = vpop.f32.mrf.mxu1  ;;  %v504_v15 = vpop.f32.mrf.mxu3  ;;  %v492_v25 = vadd.f32 %v491_v14, %v479_v23 }
  0xa9   :  { %v505_v28 = vadd.f32 %v504_v15, %v492_v25 }
  0xae   :  { %v493_v20 = vpop.f32.mrf.mxu2 }
  0xaf   :  { %v506_v21 = vpop.f32.mrf.mxu3 }
  0xb6   :  { %v543_v26 = vpop.f32.mrf.mxu2 }
  0xbe   :  { %v517_v29 = vpop.f32.mrf.mxu0  ;;  %v545_v33 = vpop.f32.mrf.mxu2 }
  0xbf   :  { %v530_v30 = vpop.f32.mrf.mxu1  ;;  %v518_v31 = vadd.f32 %v517_v29, %v505_v28 }
  0xc1   :  { %v531_v32 = vadd.f32 %v530_v30, %v518_v31 }
  0xc3   :  { %v544_v34 = vadd.f32 %v543_v26, %v531_v32 }
  0xc5   :  { %v547_v35 = vmax.f32 %v544_v34, 0.0 }
  0xc6   :  { %v519_v36 = vpop.f32.mrf.mxu0 }
  0xc7   :  { %v532_v37 = vpop.f32.mrf.mxu1  ;;  %v548_v38 = vpack.c.bf16 %v547_v35, %v547_v35 }
  0xc9   :  { %625 = vmatmul.bf16.vlgmr.msrb.gmra.mxu3 %v548_v38 }
 0x14c   :  { %v626_v42 = vpop.f32.mrf.mxu3 }
 0x14d   :  { %v627_v43 = vadd.f32 %v1071_v41, %v626_v42 }
 0x14f   :  { %v630_v44 = vmax.f32 %v627_v43, 0.0 }
 0x151   :  { %v631_v45 = vpack.c.bf16 %v630_v44, %v630_v44 }
 0x153   :  { %708 = vmatmul.bf16.vlgmr.msra.gmra.mxu2 %v631_v45 }
 0x154   :  { %v628_v46 = vpop.f32.mrf.mxu3 }
 0x1d6   :  { %v709_v48 = vpop.f32.mrf.mxu2 }
 0x1d7   :  { %v710_v49 = vadd.f32 %v1072_v47, %v709_v48 }
 0x1d9   :  { %v714_v50 = vsel %vm713_vm1, %v710_v49, -inf }
 0x1da   :  { %715 = vmax.xlane.f32.xlu0 %v714_v50 }
 0x1de   :  { %v711_v51 = vpop.f32.mrf.mxu2 }
 0x24d   :  { %v716_v52 = vpop.xlane.xlu0 %715 }
 0x24e   :  { %v717_v53 = vsub.f32 %v710_v49, %v716_v52 }
 0x250   :  { %v718_v54 = vmul.f32 1.442695, %v717_v53 }
 0x252   :  { %1073 = vpow2.f32 %v718_v54 }
 0x258   :  { %v1074_v55 = vpop.eup %1073 }
 0x259   :  { %v720_v56 = vsel %vm713_vm1, %v1074_v55, 0.0 }
 0x25a   :  { %721 = vadd.xlane.f32.xlu0 %v720_v56 }
 0x2cd   :  { %v722_v57 = vpop.xlane.xlu0 %721 }
 0x2ce   :  { %1075 = vlog2.f32 %v722_v57 }
 0x2d4   :  { %v1076_v58 = vpop.eup %1075 }
 0x2d5   :  { %v724_v59 = vmul.f32 0.6931472, %v1076_v58 }
 0x2d7   :  { %v725_v60 = vsub.f32 %v717_v53, %v724_v59 }
 0x2d9   :  { %726 = vst.msk [vmem:[#allocation2] sm:$0x3] %vm713_vm1, %v725_v60 }
 0x2da   :  { %737 = dma.vmem_to_hbm [thread:$0]  %s733_s5, 32, %s735_s19, [#allocation3]  }
 0x2db   :  { %1101 = dma.done.wait [#allocation3], 32  }
 0x2dc   :  { %1102 = vsyncadd [#allocation3], 4294967264 }
 0x2dd   :  { %742 = vsyncpa [#allocation3], 1 }

</bundles_post_ra>
